<compile_context>
chip_gen: v7x
topology: tpu7x:2x2x1
jax: 0.10.0
libtpu: 0.0.40
codegen_flags: <defaults>
</compile_context>

<pallas_src>
import math
from functools import partial

import jax
import jax.numpy as jnp
import numpy as np
from jax.experimental import pallas as pl
from jax.experimental.pallas import tpu as pltpu


# -----------------------------------------------------------------------------
# Pallas kernel: fused complex channel MLP (the forward_mlp hot path)
# -----------------------------------------------------------------------------
def _spectral_mlp_kernel(*refs, num_layers, compute_dtype):
    # refs = x_packed, w_block_0 .. w_block_{L-1}, wout_block, out_packed
    x_ref = refs[0]
    w_refs = refs[1:1 + num_layers]
    wout_ref = refs[1 + num_layers]
    out_ref = refs[2 + num_layers]

    h = x_ref[...]                                      # (tile_n, 2*C_in)
    for l in range(num_layers):
        w = w_refs[l][...]                              # (2*C_prev, 2*H)
        # one real MXU dot == full complex matmul with the blocked weights
        a = jnp.dot(h, w, preferred_element_type=jnp.float32)   # f32 (tile_n, 2H)
        # ComplexReLU(mode='real'): ReLU on the real half (first H lanes),
        # imaginary half passes through.  drop_rate = 0.0 -> Identity.
        hidden = w.shape[1] // 2
        lane = jax.lax.broadcasted_iota(jnp.int32, a.shape, 1)
        a = jnp.where(lane < hidden, jnp.maximum(a, 0.0), a)
        h = a.astype(compute_dtype)

    out_ref[...] = jnp.dot(h, wout_ref[...], preferred_element_type=jnp.float32)


def spectral_mlp_pallas(x_packed, w_blocks, wout_block, *, tile_n=512,
                        compute_dtype=jnp.bfloat16,
                        vmem_limit_bytes=48 * 1024 * 1024):
    """x_packed: (N, 2*C_in) f32 = [real | imag].  Returns (N, 2*C_out) f32."""
    N, c2_in = x_packed.shape
    c2_out = int(wout_block.shape[1])
    num_layers = len(w_blocks)

    # bf16 matmul operands: bf16-native MXU on v6e/v7x, half the HBM traffic
    # and VMEM footprint.  Accumulation stays f32 inside the kernel.
    x_packed = x_packed.astype(compute_dtype)
    w_blocks = [w.astype(compute_dtype) for w in w_blocks]
    wout_block = wout_block.astype(compute_dtype)

    # Keep tile_n a multiple of 128; don't pad far past N for tiny problems.
    tile_n = max(128, min(tile_n, pl.cdiv(N, 128) * 128))
    n_pad = (-N) % tile_n
    if n_pad:  # zero rows are inert (ReLU(0)=0) and are sliced off below
        x_packed = jnp.pad(x_packed, ((0, n_pad), (0, 0)))
    n_padded = x_packed.shape[0]
    grid = (n_padded // tile_n,)

    x_spec = pl.BlockSpec((tile_n, c2_in), lambda i: (i, 0))
    out_spec = pl.BlockSpec((tile_n, c2_out), lambda i: (i, 0))
    # Grid-invariant weights: index_map is (0, 0) every step so the pipeline
    # keeps the resident copy instead of re-fetching.
    # TODO(synk): pipeline_mode=pl.Buffered(1) on these constant specs would
    #             also reclaim their dead second buffer at large hidden sizes.
    w_specs = [pl.BlockSpec(tuple(w.shape), lambda i: (0, 0)) for w in w_blocks]
    wout_spec = pl.BlockSpec(tuple(wout_block.shape), lambda i: (0, 0))

    # Advisory cost estimate for the XLA scheduler.
    flops = 0
    prev = c2_in
    for w in w_blocks:
        flops += 2 * n_padded * prev * int(w.shape[1])
        prev = int(w.shape[1])
    flops += 2 * n_padded * prev * c2_out
    bytes_accessed = (
        n_padded * c2_in * x_packed.dtype.itemsize
        + sum(int(np.prod(w.shape)) * w.dtype.itemsize for w in w_blocks)
        + int(np.prod(wout_block.shape)) * wout_block.dtype.itemsize
        + n_padded * c2_out * 4)

    out = pl.pallas_call(
        partial(_spectral_mlp_kernel, num_layers=num_layers,
                compute_dtype=compute_dtype),
        out_shape=jax.ShapeDtypeStruct((n_padded, c2_out), jnp.float32),
        grid_spec=pltpu.PrefetchScalarGridSpec(
            num_scalar_prefetch=0,
            grid=grid,
            in_specs=[x_spec] + w_specs + [wout_spec],
            out_specs=out_spec,
        ),
        compiler_params=pltpu.CompilerParams(
            dimension_semantics=("parallel",),
            vmem_limit_bytes=vmem_limit_bytes),
        cost_estimate=pl.CostEstimate(flops=int(flops), transcendentals=0,
                                      bytes_accessed=int(bytes_accessed)),
    )(x_packed, *w_blocks, wout_block)

    if n_pad:
        out = out[:N]
    return out


# -----------------------------------------------------------------------------
# Synthetic spherical-harmonic-like transforms (external modules in PyTorch),
# emitting channel-last coefficients directly (no transposes around the kernel)
# -----------------------------------------------------------------------------
def make_legendre(lmax, nlat):
    # Deterministic orthogonal DCT-II basis standing in for Legendre weights.
    t = (np.arange(nlat) + 0.5) / nlat
    l = np.arange(lmax)[:, None]
    P = np.cos(np.pi * l * t[None, :]) * math.sqrt(2.0 / nlat)
    P[0, :] *= 1.0 / math.sqrt(2.0)
    return jnp.asarray(P, dtype=jnp.float32)          # (lmax, nlat)


def forward_transform(x, legendre, mmax):
    # x: (B, C, nlat, nlon) f32 -> (xr, xi): (B, lmax, mmax, C) f32 each
    xf = jnp.fft.rfft(x.astype(jnp.float32), axis=-1)[..., :mmax]
    xr = jnp.einsum("lt,bctm->blmc", legendre, jnp.real(xf))
    xi = jnp.einsum("lt,bctm->blmc", legendre, jnp.imag(xf))
    return xr, xi


def inverse_transform(yr, yi, legendre, nlon):
    # yr, yi: (B, lmax, mmax, C_out) f32 -> (B, C_out, nlat, nlon) f32
    fr = jnp.einsum("lt,blmc->bctm", legendre, yr)
    fi = jnp.einsum("lt,blmc->bctm", legendre, yi)
    return jnp.fft.irfft(fr + 1j * fi, n=nlon, axis=-1)


# -----------------------------------------------------------------------------
# SpectralAttention (operator_type='diagonal', bias=False, drop_rate=0.0)
# -----------------------------------------------------------------------------
def _block_weight(wr, wi):
    # [hr hi] @ [[wr, wi], [-wi, wr]] = [hr@wr - hi@wi, hr@wi + hi@wr]
    top = jnp.concatenate([wr, wi], axis=1)
    bot = jnp.concatenate([-wi, wr], axis=1)
    return jnp.concatenate([top, bot], axis=0)        # (2*C_in, 2*C_out)


def init_spectral_attention_params(key, in_channels, out_channels,
                                   hidden_size_factor=2, spectral_layers=1,
                                   gain=1.0):
    hidden = int(hidden_size_factor * in_channels)
    keys = jax.random.split(key, spectral_layers + 1)

    def crandn(k, shape, scale):
        kr, ki = jax.random.split(k)
        # torch.randn(complex64): real/imag each N(0, 1/2)
        wr = scale * jax.random.normal(kr, shape, jnp.float32) / math.sqrt(2.0)
        wi = scale * jax.random.normal(ki, shape, jnp.float32) / math.sqrt(2.0)
        return wr, wi

    w_list = []
    scale = math.sqrt(2.0 / float(in_channels))
    w_list.append(crandn(keys[0], (in_channels, hidden), scale))
    for l in range(1, spectral_layers):
        scale = math.sqrt(2.0 / float(hidden))
        w_list.append(crandn(keys[l], (hidden, hidden), scale))
    scale = math.sqrt(gain / float(in_channels))
    wout_r, wout_i = crandn(keys[-1], (hidden, out_channels), scale)

    params = {"w": w_list, "wout": (wout_r, wout_i)}
    params["w_blocks"] = [_block_weight(wr, wi) for wr, wi in w_list]
    params["wout_block"] = _block_weight(wout_r, wout_i)
    return params


def spectral_attention_forward(x, params, legendre, mmax):
    """x: (B, C_in, nlat, nlon) float32.  Returns (out, residual)."""
    dtype = x.dtype
    residual = x                        # scale_residual is False (same grids)

    xr, xi = forward_transform(x, legendre, mmax)     # (B, L, M, C) f32 each
    B, L, M, C = xr.shape
    x_packed = jnp.concatenate([xr, xi], axis=-1).reshape(B * L * M, 2 * C)

    out = spectral_mlp_pallas(x_packed, params["w_blocks"],
                              params["wout_block"])
    c_out = out.shape[-1] // 2
    out = out.reshape(B, L, M, 2 * c_out)
    yr, yi = out[..., :c_out], out[..., c_out:]

    x_out = inverse_transform(yr, yi, legendre, x.shape[-1]).astype(dtype)
    return x_out, residual


def _mlp_reference(xr, xi, params, compute_dtype=jnp.bfloat16):
    """Pure-JAX complex reference of forward_mlp (channel-last layout), with
    the kernel's compute-dtype rounding mirrored so tolerances stay tight."""
    hp = jax.lax.Precision.HIGHEST

    def q(a):
        return a.astype(compute_dtype).astype(jnp.float32)

    def cdot(hr, hi, wr, wi):
        nr = (jnp.einsum("blmi,io->blmo", hr, wr, precision=hp)
              - jnp.einsum("blmi,io->blmo", hi, wi, precision=hp))
        ni = (jnp.einsum("blmi,io->blmo", hr, wi, precision=hp)
              + jnp.einsum("blmi,io->blmo", hi, wr, precision=hp))
        return nr, ni

    hr, hi = q(xr), q(xi)
    for wr, wi in params["w"]:
        nr, ni = cdot(hr, hi, q(wr), q(wi))
        hr = q(jnp.maximum(nr, 0.0))      # ComplexReLU(mode='real')
        hi = q(ni)
    outr, outi = cdot(hr, hi, q(params["wout"][0]), q(params["wout"][1]))
    return outr, outi


if __name__ == "__main__":
    B, C_in, C_out = 2, 4, 4
    nlat, nlon = 16, 32
    lmax, mmax = nlat, nlon // 2 + 1
    spectral_layers = 1
    hidden_size_factor = 2

    key = jax.random.PRNGKey(0)
    kx, kp = jax.random.split(key)
    x = jax.random.normal(kx, (B, C_in, nlat, nlon), dtype=jnp.float32)

    params = init_spectral_attention_params(
        kp, C_in, C_out, hidden_size_factor, spectral_layers, gain=1.0)
    legendre = make_legendre(lmax, nlat)

    out, residual = spectral_attention_forward(x, params, legendre, mmax)
    out = jax.block_until_ready(out)
    residual = jax.block_until_ready(residual)

    assert out.shape == (B, C_out, nlat, nlon), out.shape
    assert residual.shape == x.shape

    # correctness: Pallas packed/bf16 MLP vs pure-JAX complex reference
    xr, xi = forward_transform(x, legendre, mmax)
    ref_r, ref_i = _mlp_reference(xr, xi, params)
    x_packed = jnp.concatenate([xr, xi], axis=-1).reshape(-1, 2 * C_in)
    got = spectral_mlp_pallas(x_packed, params["w_blocks"],
                              params["wout_block"])
    got = jax.block_until_ready(got).reshape(B, lmax, mmax, 2 * C_out)
    np.testing.assert_allclose(np.asarray(got[..., :C_out]),
                               np.asarray(ref_r), rtol=2e-2, atol=5e-2)
    np.testing.assert_allclose(np.asarray(got[..., C_out:]),
                               np.asarray(ref_i), rtol=2e-2, atol=5e-2)

    print("KERNEL_OK")
</pallas_src>

<mosaic_0001>
module attributes {stable_mosaic.version = 11 : i64} {
  func.func @_spectral_mlp_kernel(%arg0: i32, %arg1: memref<512x8xbf16, #tpu.memory_space<vmem>>, %arg2: memref<8x16xbf16, #tpu.memory_space<vmem>>, %arg3: memref<16x8xbf16, #tpu.memory_space<vmem>>, %arg4: memref<512x8xf32, #tpu.memory_space<vmem>>) attributes {dimension_semantics = [#tpu.dimension_semantics<parallel>], iteration_bounds = array<i64: 2>, scalar_prefetch = 0 : i64, scratch_operands = 0 : i64, tpu.core_type = #tpu.core_type<tc>, window_params = [{transform_indices = @transform_0, window_bounds = array<i64: 512, 8>}, {pipeline_mode = #tpu.pipeline_mode<synchronous>, transform_indices = @transform_1, window_bounds = array<i64: 8, 16>}, {pipeline_mode = #tpu.pipeline_mode<synchronous>, transform_indices = @transform_2, window_bounds = array<i64: 16, 8>}, {transform_indices = @transform_3, window_bounds = array<i64: 512, 8>}]} {
    %c0 = arith.constant 0 : index
    %c0_0 = arith.constant 0 : index
    %0 = vector.load %arg1[%c0, %c0_0] : memref<512x8xbf16, #tpu.memory_space<vmem>>, vector<512x8xbf16>
    %c0_1 = arith.constant 0 : index
    %c0_2 = arith.constant 0 : index
    %1 = vector.load %arg2[%c0_1, %c0_2] : memref<8x16xbf16, #tpu.memory_space<vmem>>, vector<8x16xbf16>
    %cst = arith.constant dense<0.000000e+00> : vector<512x16xf32>
    %2 = tpu.matmul %0, %1, %cst {dimension_numbers = #tpu.dot_dimension_numbers<[1], [0], [0], [1], [0, 0, 1, 1], [], []>} : vector<512x8xbf16>, vector<8x16xbf16>, vector<512x16xf32> -> vector<512x16xf32>
    %3 = tpu.iota {dimensions = array<i32: 1>} : vector<512x16xi32>
    %c8_i32 = arith.constant 8 : i32
    %4 = vector.broadcast %c8_i32 : i32 to vector<512x16xi32>
    %5 = arith.cmpi slt, %3, %4 : vector<512x16xi32>
    %cst_3 = arith.constant 0.000000e+00 : f32
    %6 = vector.broadcast %cst_3 : f32 to vector<512x16xf32>
    %7 = arith.maximumf %2, %6 : vector<512x16xf32>
    %8 = arith.select %5, %7, %2 : vector<512x16xi1>, vector<512x16xf32>
    %9 = arith.truncf %8 : vector<512x16xf32> to vector<512x16xbf16>
    %c0_4 = arith.constant 0 : index
    %c0_5 = arith.constant 0 : index
    %10 = vector.load %arg3[%c0_4, %c0_5] : memref<16x8xbf16, #tpu.memory_space<vmem>>, vector<16x8xbf16>
    %cst_6 = arith.constant dense<0.000000e+00> : vector<512x8xf32>
    %11 = tpu.matmul %9, %10, %cst_6 {dimension_numbers = #tpu.dot_dimension_numbers<[1], [0], [0], [1], [0, 0, 1, 1], [], []>} : vector<512x16xbf16>, vector<16x8xbf16>, vector<512x8xf32> -> vector<512x8xf32>
    %c0_7 = arith.constant 0 : index
    %c0_8 = arith.constant 0 : index
    %12 = vector.load %arg4[%c0_7, %c0_8] : memref<512x8xf32, #tpu.memory_space<vmem>>, vector<512x8xf32>
    tpu.vector_store %arg4[%c0_7, %c0_8], %11 {strides = array<i32>} : memref<512x8xf32, #tpu.memory_space<vmem>>, vector<512x8xf32>,
    return
  }
  func.func @transform_0(%arg0: i32) -> (i32, i32) {
    %c0_i32 = arith.constant 0 : i32
    %c0_i32_0 = arith.constant 0 : i32
    return %arg0, %c0_i32 : i32, i32
  }
  func.func @transform_1(%arg0: i32) -> (i32, i32) {
    %c0_i32 = arith.constant 0 : i32
    %c0_i32_0 = arith.constant 0 : i32
    %c0_i32_1 = arith.constant 0 : i32
    return %c0_i32, %c0_i32_0 : i32, i32
  }
  func.func @transform_2(%arg0: i32) -> (i32, i32) {
    %c0_i32 = arith.constant 0 : i32
    %c0_i32_0 = arith.constant 0 : i32
    %c0_i32_1 = arith.constant 0 : i32
    return %c0_i32, %c0_i32_0 : i32, i32
  }
  func.func @transform_3(%arg0: i32) -> (i32, i32) {
    %c0_i32 = arith.constant 0 : i32
    %c0_i32_0 = arith.constant 0 : i32
    return %arg0, %c0_i32 : i32, i32
  }
}

</mosaic_0001>

<bundles_post_ra>
// kernel: tpu_custom_call.1
= control target key start
LH: loop header
LB: loop body
LE: loop exit
PB: predicated region body
PF: predicated region fallthrough
CT: control target
= control target key end

     0   :  { %s1843_s12 = smov 0   ;;  %s2229_s0 = inlined_call_operand.vmem [shape: bf16[1024,8], index: 0, kind: input, shape index: {}]   ;;  %s2230_s1 = inlined_call_operand.vmem [shape: bf16[8,16], index: 1, kind: input, shape index: {}]   ;;  %s2231_s2 = inlined_call_operand.vmem [shape: bf16[16,8], index: 2, kind: input, shape index: {}]   ;;  %s2232_s3 = inlined_call_operand.vmem [shape: f32[1024,8], index: 3, kind: output, shape index: {}]  }
   0x1 LB: > { %s1467_s13 = sadd.s32 4294967295, %s1821_s12   ;;  %p1471_p0 = scmp.ge.s32.totalorder %s1821_s12, 1  ;;  %s1821_s12 = sphi %s1843_s12, %s13_s12  }
   0x2   : > { %p138_p1 = scmp.lt.s32.totalorder %s1821_s12, 3 }
   0x4   : > { %p139_p2 = pnand %p1471_p0, %p138_p1 }
   0x5   : > { %v239_v0 = vld [vmem:[%s2230_s1] sm:$0xf] (!%p139_p2)  ;;  %vm497_vm0 = vcmask (!%p139_p2), 1043456   ;;  %s1472_s16 = sshll.u32 (!%p139_p2), %s1467_s13, 6  ;;  %vm400_vm1 = vcmask (!%p139_p2), 64512   ;;  %v790_v35 = vlaneseq (!%p139_p2)  ;;  %vm961_vm3 = vcmask (!%p139_p2), 130048  }
   0x6   : > { %142 = sbr.rel (%p139_p2) target bundleno = 575 (0x23f), region = 32  ;;  %1773 = vmatprep.subr.msk.bf16.mxu0 (!%p139_p2), %vm497_vm0, %v239_v0  ;;  %v499_v1 = vsel (!%p139_p2), %vm497_vm0, %v239_v0, 0  ;;  %p163_p3 = scmp.lt.s32.totalorder (!%p139_p2), %s1472_s16, 127  ;;  %v1814_v27 = vld [vmem:[%s2231_s2] sm:$0xff] (!%p139_p2)  }
   0x7   : > { %1642 = vmatpush3.bf16.msra.mxu0 (!%p139_p2), %v499_v1  ;;  %1707 = vmatprep.subr.bf16.mxu1 (!%p139_p2), %v1814_v27  ;;  %v1929_v36 = vand.u32 (!%p139_p2), 127, %v790_v35 }
   0x8   : > { %1708 = vmatpush3.bf16.msra.mxu1 (!%p139_p2), %v1814_v27 }
   0x9   : > { %vm792_vm2 = vcmp.lt.s32.totalorder (!%p139_p2), %v1929_v36, 8 }
   0xd   : > { %s2234_s16 = smov (!%p163_p3, %s1472_s16), 127 }
   0xe   : > { %s1473_s17 = sshll.u32 %s2234_s16, 2  ;;  %s1475_s23 = sshll.u32 %s2234_s16, 3 }
   0xf   : > { %s1860_s20 = scalar_lea.vmem %s2229_s0, %s1473_s17  ;;  %s2096_s26 = scalar_lea.vmem %s2232_s3, %s1475_s23 }
  0x10   : > { %v1782_v2 = vld [vmem:[%s1860_s20] sm:$0xff]   ;;  %v1783_v3 = vld [vmem:[%s1860_s20 + $0x8] sm:$0xff]   ;;  %v1784_v4 = vld [vmem:[%s1860_s20 + $0x10] sm:$0xff]  }
  0x11   : > { %1643 = vmatprep.mubr.msk.bf16.mxu0 %vm400_vm1, %v1782_v2  ;;  %v1785_v5 = vld [vmem:[%s1860_s20 + $0x18] sm:$0xff]   ;;  %v1786_v6 = vld [vmem:[%s1860_s20 + $0x20] sm:$0xff]   ;;  %v1787_v7 = vld [vmem:[%s1860_s20 + $0x28] sm:$0xff]  }
  0x12   : > { %1644 = vmatmul.mubr.msk.bf16.vlgmr.msra.gmra.mrb[0].mxu0 %vm400_vm1, %v1783_v3  ;;  %v1788_v8 = vld [vmem:[%s1860_s20 + $0x30] sm:$0xff]   ;;  %v1789_v9 = vld [vmem:[%s1860_s20 + $0x38] sm:$0xff]   ;;  %v1790_v10 = vld [vmem:[%s1860_s20 + $0x40] sm:$0xff]  }
  0x13   : > { %1647 = vmatprep.mubr.msk.bf16.mxu0 %vm400_vm1, %v1784_v4  ;;  %v1791_v11 = vld [vmem:[%s1860_s20 + $0x48] sm:$0xff]   ;;  %v1792_v12 = vld [vmem:[%s1860_s20 + $0x50] sm:$0xff]   ;;  %v1793_v13 = vld [vmem:[%s1860_s20 + $0x58] sm:$0xff]  }
  0x14   : > { %v1794_v14 = vld [vmem:[%s1860_s20 + $0x60] sm:$0xff]   ;;  %v1795_v15 = vld [vmem:[%s1860_s20 + $0x68] sm:$0xff]   ;;  %v1796_v16 = vld [vmem:[%s1860_s20 + $0x70] sm:$0xff]  }
  0x15   : > { %v1797_v17 = vld [vmem:[%s1860_s20 + $0x78] sm:$0xff]   ;;  %v1798_v18 = vld [vmem:[%s1860_s20 + $0x80] sm:$0xff]   ;;  %v1799_v19 = vld [vmem:[%s1860_s20 + $0x88] sm:$0xff]  }
  0x16   : > { %v1800_v20 = vld [vmem:[%s1860_s20 + $0x90] sm:$0xff]   ;;  %v1801_v21 = vld [vmem:[%s1860_s20 + $0x98] sm:$0xff]   ;;  %v1802_v22 = vld [vmem:[%s1860_s20 + $0xa0] sm:$0xff]  }
  0x17   : > { %v1803_v23 = vld [vmem:[%s1860_s20 + $0xa8] sm:$0xff]   ;;  %v1804_v24 = vld [vmem:[%s1860_s20 + $0xb0] sm:$0xff]   ;;  %v1805_v25 = vld [vmem:[%s1860_s20 + $0xb8] sm:$0xff]  }
  0x18   : > { %v1806_v26 = vld [vmem:[%s1860_s20 + $0xc0] sm:$0xff]   ;;  %v1807_v28 = vld [vmem:[%s1860_s20 + $0xc8] sm:$0xff]   ;;  %v1808_v29 = vld [vmem:[%s1860_s20 + $0xd0] sm:$0xff]  }
  0x19   : > { %v1809_v30 = vld [vmem:[%s1860_s20 + $0xd8] sm:$0xff]   ;;  %v1810_v31 = vld [vmem:[%s1860_s20 + $0xe0] sm:$0xff]   ;;  %v1811_v32 = vld [vmem:[%s1860_s20 + $0xe8] sm:$0xff]  }
  0x1a   : > { %1648 = vmatmul.mubr.msk.bf16.gmra.mrb[4].mxu0 %vm400_vm1, %v1785_v5  ;;  %v1812_v33 = vld [vmem:[%s1860_s20 + $0xf0] sm:$0xff]   ;;  %v1813_v34 = vld [vmem:[%s1860_s20 + $0xf8] sm:$0xff]  }
  0x1b   : > { %1651 = vmatprep.mubr.msk.bf16.mxu0 %vm400_vm1, %v1786_v6 }
  0x22   : > { %1652 = vmatmul.mubr.msk.bf16.gmra.mrb[8].mxu0 %vm400_vm1, %v1787_v7 }
  0x23   : > { %1655 = vmatprep.mubr.msk.bf16.mxu0 %vm400_vm1, %v1788_v8 }
  0x2a   : > { %1656 = vmatmul.mubr.msk.bf16.gmra.mrb[12].mxu0 %vm400_vm1, %v1789_v9 }
  0x2b   : > { %1659 = vmatprep.mubr.msk.bf16.mxu0 %vm400_vm1, %v1790_v10 }
  0x32   : > { %1660 = vmatmul.mubr.msk.bf16.gmra.mrb[16].mxu0 %vm400_vm1, %v1791_v11 }
  0x33   : > { %1663 = vmatprep.mubr.msk.bf16.mxu0 %vm400_vm1, %v1792_v12 }
  0x3a   : > { %1664 = vmatmul.mubr.msk.bf16.gmra.mrb[20].mxu0 %vm400_vm1, %v1793_v13 }
  0x3b   : > { %1667 = vmatprep.mubr.msk.bf16.mxu0 %vm400_vm1, %v1794_v14 }
  0x42   : > { %1668 = vmatmul.mubr.msk.bf16.gmra.mrb[24].mxu0 %vm400_vm1, %v1795_v15 }
  0x43   : > { %1671 = vmatprep.mubr.msk.bf16.mxu0 %vm400_vm1, %v1796_v16 }
  0x4a   : > { %1672 = vmatmul.mubr.msk.bf16.gmra.mrb[28].mxu0 %vm400_vm1, %v1797_v17 }
  0x4b   : > { %1675 = vmatprep.mubr.msk.bf16.mxu0 %vm400_vm1, %v1798_v18 }
  0x52   : > { %1676 = vmatmul.mubr.msk.bf16.gmra.mrb[32].mxu0 %vm400_vm1, %v1799_v19 }
  0x53   : > { %1679 = vmatprep.mubr.msk.bf16.mxu0 %vm400_vm1, %v1800_v20 }
  0x5a   : > { %1680 = vmatmul.mubr.msk.bf16.gmra.mrb[36].mxu0 %vm400_vm1, %v1801_v21 }
  0x5b   : > { %1683 = vmatprep.mubr.msk.bf16.mxu0 %vm400_vm1, %v1802_v22 }
  0x62   : > { %1684 = vmatmul.mubr.msk.bf16.gmra.mrb[40].mxu0 %vm400_vm1, %v1803_v23 }
  0x63   : > { %1687 = vmatprep.mubr.msk.bf16.mxu0 %vm400_vm1, %v1804_v24 }
  0x6a   : > { %1688 = vmatmul.mubr.msk.bf16.gmra.mrb[44].mxu0 %vm400_vm1, %v1805_v25 }
  0x6b   : > { %1691 = vmatprep.mubr.msk.bf16.mxu0 %vm400_vm1, %v1806_v26 }
  0x72   : > { %1692 = vmatmul.mubr.msk.bf16.gmra.mrb[48].mxu0 %vm400_vm1, %v1807_v28 }
  0x73   : > { %1695 = vmatprep.mubr.msk.bf16.mxu0 %vm400_vm1, %v1808_v29 }
  0x7a   : > { %1696 = vmatmul.mubr.msk.bf16.gmra.mrb[52].mxu0 %vm400_vm1, %v1809_v30 }
  0x7b   : > { %1699 = vmatprep.mubr.msk.bf16.mxu0 %vm400_vm1, %v1810_v31 }
  0x82   : > { %1700 = vmatmul.mubr.msk.bf16.gmra.mrb[56].mxu0 %vm400_vm1, %v1811_v32 }
  0x83   : > { %1703 = vmatprep.mubr.msk.bf16.mxu0 %vm400_vm1, %v1812_v33 }
  0x8a   : > { %1704 = vmatmul.mubr.msk.bf16.gmra.mrb[60].mxu0 %vm400_vm1, %v1813_v34 }
  0xe5   : > { %v1645_v37 = vpop.f32.mrb[0].mxu0 }
  0xe6   : > { %v795_v38 = vmax.f32 %v1645_v37, 0.0  ;;  %v535_v39 = vpop.f32.mrb[1].mxu0 }
  0xe7   : > { %v793_v40 = vmax.f32 %v535_v39, 0.0  ;;  %v1646_v41 = vpop.f32.mrb[2].mxu0 }
  0xe8   : > { %v796_v42 = vmax.f32 %v1646_v41, 0.0  ;;  %v538_v43 = vpop.f32.mrb[3].mxu0  ;;  %v859_v45 = vsel %vm792_vm2, %v795_v38, %v1645_v37 }
  0xe9   : > { %v794_v44 = vmax.f32 %v538_v43, 0.0  ;;  %v857_v47 = vsel %vm792_vm2, %v793_v40, %v535_v39 }
  0xea   : > { %v860_v46 = vsel %vm792_vm2, %v796_v42, %v1646_v41 }
  0xeb   : > { %v922_v48 = vpack.c.bf16 %v860_v46, %v859_v45  ;;  %v858_v49 = vsel %vm792_vm2, %v794_v44, %v538_v43 }
  0xec   : > { %v921_v50 = vpack.c.bf16 %v858_v49, %v857_v47 }
  0xed   : > { %v1649_v51 = vpop.f32.mrb[4].mxu0 }
  0xee   : > { %v799_v52 = vmax.f32 %v1649_v51, 0.0  ;;  %v551_v53 = vpop.f32.mrb[5].mxu0  ;;  %1709 = vmatprep.mubr.msk.bf16.mxu1 %vm961_vm3, %v921_v50 }
  0xef   : > { %v797_v54 = vmax.f32 %v551_v53, 0.0  ;;  %v1650_v55 = vpop.f32.mrb[6].mxu0  ;;  %1710 = vmatmul.mubr.msk.bf16.vlgmr.msra.gmra.mrb[0].mxu1 %vm961_vm3, %v922_v48 }
  0xf0   : > { %v800_v56 = vmax.f32 %v1650_v55, 0.0  ;;  %v554_v57 = vpop.f32.mrb[7].mxu0  ;;  %v863_v59 = vsel %vm792_vm2, %v799_v52, %v1649_v51 }
  0xf1   : > { %v798_v58 = vmax.f32 %v554_v57, 0.0  ;;  %v861_v61 = vsel %vm792_vm2, %v797_v54, %v551_v53 }
  0xf2   : > { %v864_v60 = vsel %vm792_vm2, %v800_v56, %v1650_v55 }
  0xf3   : > { %v924_v62 = vpack.c.bf16 %v864_v60, %v863_v59  ;;  %v862_v63 = vsel %vm792_vm2, %v798_v58, %v554_v57 }
  0xf4   : > { %v923_v0 = vpack.c.bf16 %v862_v63, %v861_v61 }
  0xf5   : > { %v1653_v1 = vpop.f32.mrb[8].mxu0 }
  0xf6   : > { %v803_v2 = vmax.f32 %v1653_v1, 0.0  ;;  %v567_v3 = vpop.f32.mrb[9].mxu0  ;;  %1713 = vmatprep.mubr.msk.bf16.mxu1 %vm961_vm3, %v923_v0 }
  0xf7   : > { %v801_v4 = vmax.f32 %v567_v3, 0.0  ;;  %v1654_v5 = vpop.f32.mrb[10].mxu0  ;;  %1714 = vmatmul.mubr.msk.bf16.gmra.mrb[4].mxu1 %vm961_vm3, %v924_v62 }
  0xf8   : > { %v804_v6 = vmax.f32 %v1654_v5, 0.0  ;;  %v570_v7 = vpop.f32.mrb[11].mxu0  ;;  %v867_v9 = vsel %vm792_vm2, %v803_v2, %v1653_v1 }
  0xf9   : > { %v802_v8 = vmax.f32 %v570_v7, 0.0  ;;  %v865_v11 = vsel %vm792_vm2, %v801_v4, %v567_v3 }
  0xfa   : > { %v868_v10 = vsel %vm792_vm2, %v804_v6, %v1654_v5 }
  0xfb   : > { %v926_v12 = vpack.c.bf16 %v868_v10, %v867_v9  ;;  %v866_v13 = vsel %vm792_vm2, %v802_v8, %v570_v7 }
  0xfc   : > { %v925_v14 = vpack.c.bf16 %v866_v13, %v865_v11 }
  0xfd   : > { %v1657_v15 = vpop.f32.mrb[12].mxu0 }
  0xfe   : > { %v807_v16 = vmax.f32 %v1657_v15, 0.0  ;;  %v583_v17 = vpop.f32.mrb[13].mxu0  ;;  %1717 = vmatprep.mubr.msk.bf16.mxu1 %vm961_vm3, %v925_v14 }
  0xff   : > { %v805_v18 = vmax.f32 %v583_v17, 0.0  ;;  %v1658_v19 = vpop.f32.mrb[14].mxu0  ;;  %1718 = vmatmul.mubr.msk.bf16.gmra.mrb[8].mxu1 %vm961_vm3, %v926_v12 }
 0x100   : > { %v808_v20 = vmax.f32 %v1658_v19, 0.0  ;;  %v586_v21 = vpop.f32.mrb[15].mxu0  ;;  %v871_v23 = vsel %vm792_vm2, %v807_v16, %v1657_v15 }
 0x101   : > { %v806_v22 = vmax.f32 %v586_v21, 0.0  ;;  %v869_v25 = vsel %vm792_vm2, %v805_v18, %v583_v17 }
 0x102   : > { %v872_v24 = vsel %vm792_vm2, %v808_v20, %v1658_v19 }
 0x103   : > { %v928_v26 = vpack.c.bf16 %v872_v24, %v871_v23  ;;  %v870_v27 = vsel %vm792_vm2, %v806_v22, %v586_v21 }
 0x104   : > { %v927_v28 = vpack.c.bf16 %v870_v27, %v869_v25 }
 0x105   : > { %v1661_v29 = vpop.f32.mrb[16].mxu0 }
 0x106   : > { %v811_v30 = vmax.f32 %v1661_v29, 0.0  ;;  %v599_v31 = vpop.f32.mrb[17].mxu0  ;;  %1721 = vmatprep.mubr.msk.bf16.mxu1 %vm961_vm3, %v927_v28 }
 0x107   : > { %v809_v32 = vmax.f32 %v599_v31, 0.0  ;;  %v1662_v33 = vpop.f32.mrb[18].mxu0  ;;  %1722 = vmatmul.mubr.msk.bf16.gmra.mrb[12].mxu1 %vm961_vm3, %v928_v26 }
 0x108   : > { %v812_v34 = vmax.f32 %v1662_v33, 0.0  ;;  %v602_v35 = vpop.f32.mrb[19].mxu0  ;;  %v875_v38 = vsel %vm792_vm2, %v811_v30, %v1661_v29 }
 0x109   : > { %v810_v37 = vmax.f32 %v602_v35, 0.0  ;;  %v873_v40 = vsel %vm792_vm2, %v809_v32, %v599_v31 }
 0x10a   : > { %v876_v39 = vsel %vm792_vm2, %v812_v34, %v1662_v33 }
 0x10b   : > { %v930_v41 = vpack.c.bf16 %v876_v39, %v875_v38  ;;  %v874_v42 = vsel %vm792_vm2, %v810_v37, %v602_v35 }
 0x10c   : > { %v929_v43 = vpack.c.bf16 %v874_v42, %v873_v40 }
 0x10d   : > { %v1665_v44 = vpop.f32.mrb[20].mxu0 }
 0x10e   : > { %v815_v45 = vmax.f32 %v1665_v44, 0.0  ;;  %v615_v46 = vpop.f32.mrb[21].mxu0  ;;  %1725 = vmatprep.mubr.msk.bf16.mxu1 %vm961_vm3, %v929_v43 }
 0x10f   : > { %v813_v47 = vmax.f32 %v615_v46, 0.0  ;;  %v1666_v48 = vpop.f32.mrb[22].mxu0  ;;  %1726 = vmatmul.mubr.msk.bf16.gmra.mrb[16].mxu1 %vm961_vm3, %v930_v41 }
 0x110   : > { %v816_v49 = vmax.f32 %v1666_v48, 0.0  ;;  %v618_v50 = vpop.f32.mrb[23].mxu0  ;;  %v879_v52 = vsel %vm792_vm2, %v815_v45, %v1665_v44 }
 0x111   : > { %v814_v51 = vmax.f32 %v618_v50, 0.0  ;;  %v877_v54 = vsel %vm792_vm2, %v813_v47, %v615_v46 }
 0x112   : > { %v880_v53 = vsel %vm792_vm2, %v816_v49, %v1666_v48 }
 0x113   : > { %v932_v55 = vpack.c.bf16 %v880_v53, %v879_v52  ;;  %v878_v56 = vsel %vm792_vm2, %v814_v51, %v618_v50 }
 0x114   : > { %v931_v57 = vpack.c.bf16 %v878_v56, %v877_v54 }
 0x115   : > { %v1669_v58 = vpop.f32.mrb[24].mxu0 }
 0x116   : > { %v819_v59 = vmax.f32 %v1669_v58, 0.0  ;;  %v631_v60 = vpop.f32.mrb[25].mxu0  ;;  %1729 = vmatprep.mubr.msk.bf16.mxu1 %vm961_vm3, %v931_v57 }
 0x117   : > { %v817_v61 = vmax.f32 %v631_v60, 0.0  ;;  %v1670_v62 = vpop.f32.mrb[26].mxu0  ;;  %1730 = vmatmul.mubr.msk.bf16.gmra.mrb[20].mxu1 %vm961_vm3, %v932_v55 }
 0x118   : > { %v820_v63 = vmax.f32 %v1670_v62, 0.0  ;;  %v634_v0 = vpop.f32.mrb[27].mxu0  ;;  %v883_v2 = vsel %vm792_vm2, %v819_v59, %v1669_v58 }
 0x119   : > { %v818_v1 = vmax.f32 %v634_v0, 0.0  ;;  %v881_v4 = vsel %vm792_vm2, %v817_v61, %v631_v60 }
 0x11a   : > { %v884_v3 = vsel %vm792_vm2, %v820_v63, %v1670_v62 }
 0x11b   : > { %v934_v5 = vpack.c.bf16 %v884_v3, %v883_v2  ;;  %v882_v6 = vsel %vm792_vm2, %v818_v1, %v634_v0 }
 0x11c   : > { %v933_v7 = vpack.c.bf16 %v882_v6, %v881_v4 }
 0x11d   : > { %v1673_v8 = vpop.f32.mrb[28].mxu0 }
 0x11e   : > { %v823_v9 = vmax.f32 %v1673_v8, 0.0  ;;  %v647_v10 = vpop.f32.mrb[29].mxu0  ;;  %1733 = vmatprep.mubr.msk.bf16.mxu1 %vm961_vm3, %v933_v7 }
 0x11f   : > { %v821_v11 = vmax.f32 %v647_v10, 0.0  ;;  %v1674_v12 = vpop.f32.mrb[30].mxu0  ;;  %1734 = vmatmul.mubr.msk.bf16.gmra.mrb[24].mxu1 %vm961_vm3, %v934_v5 }
 0x120   : > { %v824_v13 = vmax.f32 %v1674_v12, 0.0  ;;  %v650_v14 = vpop.f32.mrb[31].mxu0  ;;  %v887_v16 = vsel %vm792_vm2, %v823_v9, %v1673_v8 }
 0x121   : > { %v822_v15 = vmax.f32 %v650_v14, 0.0  ;;  %v885_v18 = vsel %vm792_vm2, %v821_v11, %v647_v10 }
 0x122   : > { %v888_v17 = vsel %vm792_vm2, %v824_v13, %v1674_v12 }
 0x123   : > { %v936_v19 = vpack.c.bf16 %v888_v17, %v887_v16  ;;  %v886_v20 = vsel %vm792_vm2, %v822_v15, %v650_v14 }
 0x124   : > { %v935_v21 = vpack.c.bf16 %v886_v20, %v885_v18 }
 0x125   : > { %v1677_v22 = vpop.f32.mrb[32].mxu0 }
 0x126   : > { %v827_v23 = vmax.f32 %v1677_v22, 0.0  ;;  %v663_v24 = vpop.f32.mrb[33].mxu0  ;;  %1737 = vmatprep.mubr.msk.bf16.mxu1 %vm961_vm3, %v935_v21 }
 0x127   : > { %v825_v25 = vmax.f32 %v663_v24, 0.0  ;;  %v1678_v26 = vpop.f32.mrb[34].mxu0  ;;  %1738 = vmatmul.mubr.msk.bf16.gmra.mrb[28].mxu1 %vm961_vm3, %v936_v19 }
 0x128   : > { %v828_v27 = vmax.f32 %v1678_v26, 0.0  ;;  %v666_v28 = vpop.f32.mrb[35].mxu0  ;;  %v891_v30 = vsel %vm792_vm2, %v827_v23, %v1677_v22 }
 0x129   : > { %v826_v29 = vmax.f32 %v666_v28, 0.0  ;;  %v889_v32 = vsel %vm792_vm2, %v825_v25, %v663_v24 }
 0x12a   : > { %v892_v31 = vsel %vm792_vm2, %v828_v27, %v1678_v26 }
 0x12b   : > { %v938_v33 = vpack.c.bf16 %v892_v31, %v891_v30  ;;  %v890_v34 = vsel %vm792_vm2, %v826_v29, %v666_v28 }
 0x12c   : > { %v937_v35 = vpack.c.bf16 %v890_v34, %v889_v32 }
 0x12d   : > { %v1681_v37 = vpop.f32.mrb[36].mxu0 }
 0x12e   : > { %v831_v38 = vmax.f32 %v1681_v37, 0.0  ;;  %v679_v39 = vpop.f32.mrb[37].mxu0  ;;  %1741 = vmatprep.mubr.msk.bf16.mxu1 %vm961_vm3, %v937_v35 }
 0x12f   : > { %v829_v40 = vmax.f32 %v679_v39, 0.0  ;;  %v1682_v41 = vpop.f32.mrb[38].mxu0  ;;  %1742 = vmatmul.mubr.msk.bf16.gmra.mrb[32].mxu1 %vm961_vm3, %v938_v33 }
 0x130   : > { %v832_v42 = vmax.f32 %v1682_v41, 0.0  ;;  %v682_v43 = vpop.f32.mrb[39].mxu0  ;;  %v895_v45 = vsel %vm792_vm2, %v831_v38, %v1681_v37 }
 0x131   : > { %v830_v44 = vmax.f32 %v682_v43, 0.0  ;;  %v893_v47 = vsel %vm792_vm2, %v829_v40, %v679_v39 }
 0x132   : > { %v896_v46 = vsel %vm792_vm2, %v832_v42, %v1682_v41 }
 0x133   : > { %v940_v48 = vpack.c.bf16 %v896_v46, %v895_v45  ;;  %v894_v49 = vsel %vm792_vm2, %v830_v44, %v682_v43 }
 0x134   : > { %v939_v50 = vpack.c.bf16 %v894_v49, %v893_v47 }
 0x135   : > { %v1685_v51 = vpop.f32.mrb[40].mxu0 }
 0x136   : > { %v835_v52 = vmax.f32 %v1685_v51, 0.0  ;;  %v695_v53 = vpop.f32.mrb[41].mxu0  ;;  %1745 = vmatprep.mubr.msk.bf16.mxu1 %vm961_vm3, %v939_v50 }
 0x137   : > { %v833_v54 = vmax.f32 %v695_v53, 0.0  ;;  %v1686_v55 = vpop.f32.mrb[42].mxu0  ;;  %1746 = vmatmul.mubr.msk.bf16.gmra.mrb[36].mxu1 %vm961_vm3, %v940_v48 }
 0x138   : > { %v836_v56 = vmax.f32 %v1686_v55, 0.0  ;;  %v698_v57 = vpop.f32.mrb[43].mxu0  ;;  %v899_v59 = vsel %vm792_vm2, %v835_v52, %v1685_v51 }
 0x139   : > { %v834_v58 = vmax.f32 %v698_v57, 0.0  ;;  %v897_v61 = vsel %vm792_vm2, %v833_v54, %v695_v53 }
 0x13a   : > { %v900_v60 = vsel %vm792_vm2, %v836_v56, %v1686_v55 }
 0x13b   : > { %v942_v62 = vpack.c.bf16 %v900_v60, %v899_v59  ;;  %v898_v63 = vsel %vm792_vm2, %v834_v58, %v698_v57 }
 0x13c   : > { %v941_v0 = vpack.c.bf16 %v898_v63, %v897_v61 }
 0x13d   : > { %v1689_v1 = vpop.f32.mrb[44].mxu0 }
 0x13e   : > { %v839_v2 = vmax.f32 %v1689_v1, 0.0  ;;  %v711_v3 = vpop.f32.mrb[45].mxu0  ;;  %1749 = vmatprep.mubr.msk.bf16.mxu1 %vm961_vm3, %v941_v0 }
 0x13f   : > { %v837_v4 = vmax.f32 %v711_v3, 0.0  ;;  %v1690_v5 = vpop.f32.mrb[46].mxu0  ;;  %1750 = vmatmul.mubr.msk.bf16.gmra.mrb[40].mxu1 %vm961_vm3, %v942_v62 }
 0x140   : > { %v840_v6 = vmax.f32 %v1690_v5, 0.0  ;;  %v714_v7 = vpop.f32.mrb[47].mxu0  ;;  %v903_v9 = vsel %vm792_vm2, %v839_v2, %v1689_v1 }
 0x141   : > { %v838_v8 = vmax.f32 %v714_v7, 0.0  ;;  %v901_v11 = vsel %vm792_vm2, %v837_v4, %v711_v3 }
 0x142   : > { %v904_v10 = vsel %vm792_vm2, %v840_v6, %v1690_v5 }
 0x143   : > { %v944_v12 = vpack.c.bf16 %v904_v10, %v903_v9  ;;  %v902_v13 = vsel %vm792_vm2, %v838_v8, %v714_v7 }
 0x144   : > { %v943_v14 = vpack.c.bf16 %v902_v13, %v901_v11 }
 0x145   : > { %v1693_v15 = vpop.f32.mrb[48].mxu0 }
 0x146   : > { %v843_v16 = vmax.f32 %v1693_v15, 0.0  ;;  %v727_v17 = vpop.f32.mrb[49].mxu0  ;;  %1753 = vmatprep.mubr.msk.bf16.mxu1 %vm961_vm3, %v943_v14 }
 0x147   : > { %v841_v18 = vmax.f32 %v727_v17, 0.0  ;;  %v1694_v19 = vpop.f32.mrb[50].mxu0  ;;  %1754 = vmatmul.mubr.msk.bf16.gmra.mrb[44].mxu1 %vm961_vm3, %v944_v12 }
 0x148   : > { %v844_v20 = vmax.f32 %v1694_v19, 0.0  ;;  %v730_v21 = vpop.f32.mrb[51].mxu0  ;;  %v907_v23 = vsel %vm792_vm2, %v843_v16, %v1693_v15 }
 0x149   : > { %v842_v22 = vmax.f32 %v730_v21, 0.0  ;;  %v905_v25 = vsel %vm792_vm2, %v841_v18, %v727_v17 }
 0x14a   : > { %v908_v24 = vsel %vm792_vm2, %v844_v20, %v1694_v19 }
 0x14b   : > { %v946_v26 = vpack.c.bf16 %v908_v24, %v907_v23  ;;  %v906_v27 = vsel %vm792_vm2, %v842_v22, %v730_v21 }
 0x14c   : > { %v945_v28 = vpack.c.bf16 %v906_v27, %v905_v25 }
 0x14d   : > { %v1697_v29 = vpop.f32.mrb[52].mxu0 }
 0x14e   : > { %v847_v30 = vmax.f32 %v1697_v29, 0.0  ;;  %v743_v31 = vpop.f32.mrb[53].mxu0  ;;  %1757 = vmatprep.mubr.msk.bf16.mxu1 %vm961_vm3, %v945_v28 }
 0x14f   : > { %v845_v32 = vmax.f32 %v743_v31, 0.0  ;;  %v1698_v33 = vpop.f32.mrb[54].mxu0  ;;  %1758 = vmatmul.mubr.msk.bf16.gmra.mrb[48].mxu1 %vm961_vm3, %v946_v26 }
 0x150   : > { %v848_v34 = vmax.f32 %v1698_v33, 0.0  ;;  %v746_v35 = vpop.f32.mrb[55].mxu0  ;;  %v911_v38 = vsel %vm792_vm2, %v847_v30, %v1697_v29 }
 0x151   : > { %v846_v37 = vmax.f32 %v746_v35, 0.0  ;;  %v909_v40 = vsel %vm792_vm2, %v845_v32, %v743_v31 }
 0x152   : > { %v912_v39 = vsel %vm792_vm2, %v848_v34, %v1698_v33 }
 0x153   : > { %v948_v41 = vpack.c.bf16 %v912_v39, %v911_v38  ;;  %v910_v42 = vsel %vm792_vm2, %v846_v37, %v746_v35 }
 0x154   : > { %v947_v43 = vpack.c.bf16 %v910_v42, %v909_v40 }
 0x155   : > { %v1701_v44 = vpop.f32.mrb[56].mxu0 }
 0x156   : > { %v851_v45 = vmax.f32 %v1701_v44, 0.0  ;;  %v759_v46 = vpop.f32.mrb[57].mxu0  ;;  %1761 = vmatprep.mubr.msk.bf16.mxu1 %vm961_vm3, %v947_v43 }
 0x157   : > { %v849_v47 = vmax.f32 %v759_v46, 0.0  ;;  %v1702_v48 = vpop.f32.mrb[58].mxu0  ;;  %1762 = vmatmul.mubr.msk.bf16.gmra.mrb[52].mxu1 %vm961_vm3, %v948_v41 }
 0x158   : > { %v852_v49 = vmax.f32 %v1702_v48, 0.0  ;;  %v762_v50 = vpop.f32.mrb[59].mxu0  ;;  %v915_v52 = vsel %vm792_vm2, %v851_v45, %v1701_v44 }
 0x159   : > { %v850_v51 = vmax.f32 %v762_v50, 0.0  ;;  %v913_v54 = vsel %vm792_vm2, %v849_v47, %v759_v46 }
 0x15a   : > { %v916_v53 = vsel %vm792_vm2, %v852_v49, %v1702_v48 }
 0x15b   : > { %v950_v55 = vpack.c.bf16 %v916_v53, %v915_v52  ;;  %v914_v56 = vsel %vm792_vm2, %v850_v51, %v762_v50 }
 0x15c   : > { %v949_v57 = vpack.c.bf16 %v914_v56, %v913_v54 }
 0x15d   : > { %v1705_v58 = vpop.f32.mrb[60].mxu0 }
 0x15e   : > { %v855_v59 = vmax.f32 %v1705_v58, 0.0  ;;  %v775_v60 = vpop.f32.mrb[61].mxu0  ;;  %1765 = vmatprep.mubr.msk.bf16.mxu1 %vm961_vm3, %v949_v57 }
 0x15f   : > { %v853_v61 = vmax.f32 %v775_v60, 0.0  ;;  %v1706_v62 = vpop.f32.mrb[62].mxu0  ;;  %1766 = vmatmul.mubr.msk.bf16.gmra.mrb[56].mxu1 %vm961_vm3, %v950_v55 }
 0x160   : > { %v856_v63 = vmax.f32 %v1706_v62, 0.0  ;;  %v778_v0 = vpop.f32.mrb[63].mxu0  ;;  %v919_v2 = vsel %vm792_vm2, %v855_v59, %v1705_v58 }
 0x161   : > { %v854_v1 = vmax.f32 %v778_v0, 0.0  ;;  %v917_v4 = vsel %vm792_vm2, %v853_v61, %v775_v60 }
 0x162   : > { %v920_v3 = vsel %vm792_vm2, %v856_v63, %v1706_v62 }
 0x163   : > { %v952_v5 = vpack.c.bf16 %v920_v3, %v919_v2  ;;  %v918_v6 = vsel %vm792_vm2, %v854_v1, %v778_v0 }
 0x164   : > { %v951_v7 = vpack.c.bf16 %v918_v6, %v917_v4 }
 0x166   : > { %1769 = vmatprep.mubr.msk.bf16.mxu1 %vm961_vm3, %v951_v7 }
 0x167   : > { %1770 = vmatmul.mubr.msk.bf16.gmra.mrb[60].mxu1 %vm961_vm3, %v952_v5 }
 0x1c2   : > { %v1711_v36 = vpop.f32.mrb[0].mxu1 }
 0x1c3   : > { %1349 = vst.msk [vmem:[%s2096_s26 + $0x10] sm:$0xff] %vm400_vm1, %v1711_v36  ;;  %v1092_v8 = vpop.f32.mrb[1].mxu1 }
 0x1c4   : > { %1347 = vst.msk [vmem:[%s2096_s26] sm:$0xff] %vm400_vm1, %v1092_v8  ;;  %v1712_v9 = vpop.f32.mrb[2].mxu1 }
 0x1c5   : > { %1350 = vst.msk [vmem:[%s2096_s26 + $0x18] sm:$0xff] %vm400_vm1, %v1712_v9  ;;  %v1095_v10 = vpop.f32.mrb[3].mxu1 }
 0x1c6   : > { %1348 = vst.msk [vmem:[%s2096_s26 + $0x8] sm:$0xff] %vm400_vm1, %v1095_v10 }
 0x1ca   : > { %v1715_v11 = vpop.f32.mrb[4].mxu1 }
 0x1cb   : > { %1353 = vst.msk [vmem:[%s2096_s26 + $0x30] sm:$0xff] %vm400_vm1, %v1715_v11  ;;  %v1108_v12 = vpop.f32.mrb[5].mxu1 }
 0x1cc   : > { %1351 = vst.msk [vmem:[%s2096_s26 + $0x20] sm:$0xff] %vm400_vm1, %v1108_v12  ;;  %v1716_v13 = vpop.f32.mrb[6].mxu1 }
 0x1cd   : > { %1354 = vst.msk [vmem:[%s2096_s26 + $0x38] sm:$0xff] %vm400_vm1, %v1716_v13  ;;  %v1111_v14 = vpop.f32.mrb[7].mxu1 }
 0x1ce   : > { %1352 = vst.msk [vmem:[%s2096_s26 + $0x28] sm:$0xff] %vm400_vm1, %v1111_v14 }
 0x1d2   : > { %v1719_v15 = vpop.f32.mrb[8].mxu1 }
 0x1d3   : > { %1357 = vst.msk [vmem:[%s2096_s26 + $0x50] sm:$0xff] %vm400_vm1, %v1719_v15  ;;  %v1124_v16 = vpop.f32.mrb[9].mxu1 }
 0x1d4   : > { %1355 = vst.msk [vmem:[%s2096_s26 + $0x40] sm:$0xff] %vm400_vm1, %v1124_v16  ;;  %v1720_v17 = vpop.f32.mrb[10].mxu1 }
 0x1d5   : > { %1358 = vst.msk [vmem:[%s2096_s26 + $0x58] sm:$0xff] %vm400_vm1, %v1720_v17  ;;  %v1127_v18 = vpop.f32.mrb[11].mxu1 }
 0x1d6   : > { %1356 = vst.msk [vmem:[%s2096_s26 + $0x48] sm:$0xff] %vm400_vm1, %v1127_v18 }
 0x1da   : > { %v1723_v19 = vpop.f32.mrb[12].mxu1 }
 0x1db   : > { %1361 = vst.msk [vmem:[%s2096_s26 + $0x70] sm:$0xff] %vm400_vm1, %v1723_v19  ;;  %v1140_v20 = vpop.f32.mrb[13].mxu1 }
 0x1dc   : > { %1359 = vst.msk [vmem:[%s2096_s26 + $0x60] sm:$0xff] %vm400_vm1, %v1140_v20  ;;  %v1724_v21 = vpop.f32.mrb[14].mxu1 }
 0x1dd   : > { %1362 = vst.msk [vmem:[%s2096_s26 + $0x78] sm:$0xff] %vm400_vm1, %v1724_v21  ;;  %v1143_v22 = vpop.f32.mrb[15].mxu1 }
 0x1de   : > { %1360 = vst.msk [vmem:[%s2096_s26 + $0x68] sm:$0xff] %vm400_vm1, %v1143_v22 }
 0x1e2   : > { %v1727_v23 = vpop.f32.mrb[16].mxu1 }
 0x1e3   : > { %1365 = vst.msk [vmem:[%s2096_s26 + $0x90] sm:$0xff] %vm400_vm1, %v1727_v23  ;;  %v1156_v24 = vpop.f32.mrb[17].mxu1 }
 0x1e4   : > { %1363 = vst.msk [vmem:[%s2096_s26 + $0x80] sm:$0xff] %vm400_vm1, %v1156_v24  ;;  %v1728_v25 = vpop.f32.mrb[18].mxu1 }
 0x1e5   : > { %1366 = vst.msk [vmem:[%s2096_s26 + $0x98] sm:$0xff] %vm400_vm1, %v1728_v25  ;;  %v1159_v26 = vpop.f32.mrb[19].mxu1 }
 0x1e6   : > { %1364 = vst.msk [vmem:[%s2096_s26 + $0x88] sm:$0xff] %vm400_vm1, %v1159_v26 }
 0x1ea   : > { %v1731_v27 = vpop.f32.mrb[20].mxu1 }
 0x1eb   : > { %1369 = vst.msk [vmem:[%s2096_s26 + $0xb0] sm:$0xff] %vm400_vm1, %v1731_v27  ;;  %v1172_v28 = vpop.f32.mrb[21].mxu1 }
 0x1ec   : > { %1367 = vst.msk [vmem:[%s2096_s26 + $0xa0] sm:$0xff] %vm400_vm1, %v1172_v28  ;;  %v1732_v29 = vpop.f32.mrb[22].mxu1 }
 0x1ed   : > { %1370 = vst.msk [vmem:[%s2096_s26 + $0xb8] sm:$0xff] %vm400_vm1, %v1732_v29  ;;  %v1175_v30 = vpop.f32.mrb[23].mxu1 }
 0x1ee   : > { %1368 = vst.msk [vmem:[%s2096_s26 + $0xa8] sm:$0xff] %vm400_vm1, %v1175_v30 }
 0x1f2   : > { %v1735_v31 = vpop.f32.mrb[24].mxu1 }
 0x1f3   : > { %1373 = vst.msk [vmem:[%s2096_s26 + $0xd0] sm:$0xff] %vm400_vm1, %v1735_v31  ;;  %v1188_v32 = vpop.f32.mrb[25].mxu1 }
 0x1f4   : > { %1371 = vst.msk [vmem:[%s2096_s26 + $0xc0] sm:$0xff] %vm400_vm1, %v1188_v32  ;;  %v1736_v33 = vpop.f32.mrb[26].mxu1 }
 0x1f5   : > { %1374 = vst.msk [vmem:[%s2096_s26 + $0xd8] sm:$0xff] %vm400_vm1, %v1736_v33  ;;  %v1191_v34 = vpop.f32.mrb[27].mxu1 }
 0x1f6   : > { %1372 = vst.msk [vmem:[%s2096_s26 + $0xc8] sm:$0xff] %vm400_vm1, %v1191_v34 }
 0x1fa   : > { %v1739_v35 = vpop.f32.mrb[28].mxu1 }
 0x1fb   : > { %1377 = vst.msk [vmem:[%s2096_s26 + $0xf0] sm:$0xff] %vm400_vm1, %v1739_v35  ;;  %v1204_v37 = vpop.f32.mrb[29].mxu1 }
 0x1fc   : > { %1375 = vst.msk [vmem:[%s2096_s26 + $0xe0] sm:$0xff] %vm400_vm1, %v1204_v37  ;;  %v1740_v38 = vpop.f32.mrb[30].mxu1 }
 0x1fd   : > { %1378 = vst.msk [vmem:[%s2096_s26 + $0xf8] sm:$0xff] %vm400_vm1, %v1740_v38  ;;  %v1207_v39 = vpop.f32.mrb[31].mxu1 }
 0x1fe   : > { %1376 = vst.msk [vmem:[%s2096_s26 + $0xe8] sm:$0xff] %vm400_vm1, %v1207_v39 }
 0x202   : > { %v1743_v40 = vpop.f32.mrb[32].mxu1 }
 0x203   : > { %1381 = vst.msk [vmem:[%s2096_s26 + $0x110] sm:$0xff] %vm400_vm1, %v1743_v40  ;;  %v1220_v41 = vpop.f32.mrb[33].mxu1 }
 0x204   : > { %1379 = vst.msk [vmem:[%s2096_s26 + $0x100] sm:$0xff] %vm400_vm1, %v1220_v41  ;;  %v1744_v42 = vpop.f32.mrb[34].mxu1 }
 0x205   : > { %1382 = vst.msk [vmem:[%s2096_s26 + $0x118] sm:$0xff] %vm400_vm1, %v1744_v42  ;;  %v1223_v43 = vpop.f32.mrb[35].mxu1 }
 0x206   : > { %1380 = vst.msk [vmem:[%s2096_s26 + $0x108] sm:$0xff] %vm400_vm1, %v1223_v43 }
 0x20a   : > { %v1747_v44 = vpop.f32.mrb[36].mxu1 }
 0x20b   : > { %1385 = vst.msk [vmem:[%s2096_s26 + $0x130] sm:$0xff] %vm400_vm1, %v1747_v44  ;;  %v1236_v45 = vpop.f32.mrb[37].mxu1 }
 0x20c   : > { %1383 = vst.msk [vmem:[%s2096_s26 + $0x120] sm:$0xff] %vm400_vm1, %v1236_v45  ;;  %v1748_v46 = vpop.f32.mrb[38].mxu1 }
 0x20d   : > { %1386 = vst.msk [vmem:[%s2096_s26 + $0x138] sm:$0xff] %vm400_vm1, %v1748_v46  ;;  %v1239_v47 = vpop.f32.mrb[39].mxu1 }
 0x20e   : > { %1384 = vst.msk [vmem:[%s2096_s26 + $0x128] sm:$0xff] %vm400_vm1, %v1239_v47 }
 0x212   : > { %v1751_v48 = vpop.f32.mrb[40].mxu1 }
 0x213   : > { %1389 = vst.msk [vmem:[%s2096_s26 + $0x150] sm:$0xff] %vm400_vm1, %v1751_v48  ;;  %v1252_v49 = vpop.f32.mrb[41].mxu1 }
 0x214   : > { %1387 = vst.msk [vmem:[%s2096_s26 + $0x140] sm:$0xff] %vm400_vm1, %v1252_v49  ;;  %v1752_v50 = vpop.f32.mrb[42].mxu1 }
 0x215   : > { %1390 = vst.msk [vmem:[%s2096_s26 + $0x158] sm:$0xff] %vm400_vm1, %v1752_v50  ;;  %v1255_v51 = vpop.f32.mrb[43].mxu1 }
 0x216   : > { %1388 = vst.msk [vmem:[%s2096_s26 + $0x148] sm:$0xff] %vm400_vm1, %v1255_v51 }
 0x21a   : > { %v1755_v52 = vpop.f32.mrb[44].mxu1 }
 0x21b   : > { %1393 = vst.msk [vmem:[%s2096_s26 + $0x170] sm:$0xff] %vm400_vm1, %v1755_v52  ;;  %v1268_v53 = vpop.f32.mrb[45].mxu1 }
 0x21c   : > { %1391 = vst.msk [vmem:[%s2096_s26 + $0x160] sm:$0xff] %vm400_vm1, %v1268_v53  ;;  %v1756_v54 = vpop.f32.mrb[46].mxu1 }
 0x21d   : > { %1394 = vst.msk [vmem:[%s2096_s26 + $0x178] sm:$0xff] %vm400_vm1, %v1756_v54  ;;  %v1271_v55 = vpop.f32.mrb[47].mxu1 }
 0x21e   : > { %1392 = vst.msk [vmem:[%s2096_s26 + $0x168] sm:$0xff] %vm400_vm1, %v1271_v55 }
 0x222   : > { %v1759_v56 = vpop.f32.mrb[48].mxu1 }
 0x223   : > { %1397 = vst.msk [vmem:[%s2096_s26 + $0x190] sm:$0xff] %vm400_vm1, %v1759_v56  ;;  %v1284_v57 = vpop.f32.mrb[49].mxu1 }
 0x224   : > { %1395 = vst.msk [vmem:[%s2096_s26 + $0x180] sm:$0xff] %vm400_vm1, %v1284_v57  ;;  %v1760_v58 = vpop.f32.mrb[50].mxu1 }
 0x225   : > { %1398 = vst.msk [vmem:[%s2096_s26 + $0x198] sm:$0xff] %vm400_vm1, %v1760_v58  ;;  %v1287_v59 = vpop.f32.mrb[51].mxu1 }
 0x226   : > { %1396 = vst.msk [vmem:[%s2096_s26 + $0x188] sm:$0xff] %vm400_vm1, %v1287_v59 }
 0x22a   : > { %v1763_v60 = vpop.f32.mrb[52].mxu1 }
 0x22b   : > { %1401 = vst.msk [vmem:[%s2096_s26 + $0x1b0] sm:$0xff] %vm400_vm1, %v1763_v60  ;;  %v1300_v61 = vpop.f32.mrb[53].mxu1 }
 0x22c   : > { %1399 = vst.msk [vmem:[%s2096_s26 + $0x1a0] sm:$0xff] %vm400_vm1, %v1300_v61  ;;  %v1764_v62 = vpop.f32.mrb[54].mxu1 }
 0x22d   : > { %1402 = vst.msk [vmem:[%s2096_s26 + $0x1b8] sm:$0xff] %vm400_vm1, %v1764_v62  ;;  %v1303_v63 = vpop.f32.mrb[55].mxu1 }
 0x22e   : > { %1400 = vst.msk [vmem:[%s2096_s26 + $0x1a8] sm:$0xff] %vm400_vm1, %v1303_v63 }
 0x232   : > { %v1767_v0 = vpop.f32.mrb[56].mxu1 }
 0x233   : > { %1405 = vst.msk [vmem:[%s2096_s26 + $0x1d0] sm:$0xff] %vm400_vm1, %v1767_v0  ;;  %v1316_v1 = vpop.f32.mrb[57].mxu1 }
 0x234   : > { %1403 = vst.msk [vmem:[%s2096_s26 + $0x1c0] sm:$0xff] %vm400_vm1, %v1316_v1  ;;  %v1768_v2 = vpop.f32.mrb[58].mxu1 }
 0x235   : > { %1406 = vst.msk [vmem:[%s2096_s26 + $0x1d8] sm:$0xff] %vm400_vm1, %v1768_v2  ;;  %v1319_v3 = vpop.f32.mrb[59].mxu1 }
 0x236   : > { %1404 = vst.msk [vmem:[%s2096_s26 + $0x1c8] sm:$0xff] %vm400_vm1, %v1319_v3 }
 0x23a   : > { %v1771_v4 = vpop.f32.mrb[60].mxu1 }
 0x23b   : > { %1409 = vst.msk [vmem:[%s2096_s26 + $0x1f0] sm:$0xff] %vm400_vm1, %v1771_v4  ;;  %v1332_v5 = vpop.f32.mrb[61].mxu1 }
 0x23c   : > { %1407 = vst.msk [vmem:[%s2096_s26 + $0x1e0] sm:$0xff] %vm400_vm1, %v1332_v5  ;;  %v1772_v6 = vpop.f32.mrb[62].mxu1 }
 0x23d   : > { %1410 = vst.msk [vmem:[%s2096_s26 + $0x1f8] sm:$0xff] %vm400_vm1, %v1772_v6  ;;  %v1335_v7 = vpop.f32.mrb[63].mxu1 }
 0x23e   : > { %1408 = vst.msk [vmem:[%s2096_s26 + $0x1e8] sm:$0xff] %vm400_vm1, %v1335_v7 }
 0x23f PF: > { %s13_s12 = sadd.s32 1, %s1821_s12  }
 0x240   : > { %p10_p4 = scmp.ge.s32.totalorder %s13_s12, 4  }
 0x242   :  { %12 = sbr.rel (!%p10_p4) target bundleno = 1 (0x1), region = 62 }

</bundles_post_ra>
